<compile_context>
chip_gen: v7x
topology: tpu7x:2x2x1
jax: 0.10.0
libtpu: 0.0.40
codegen_flags: <defaults>
</compile_context>

<pallas_src>
import math

import jax
import jax.numpy as jnp
from jax.experimental import pallas as pl
from jax.experimental.pallas import tpu as pltpu

# ------------------------- model hyper-parameters -------------------------
BATCH = 2
SEQ = 8            # T
EMBED = 32         # encoder_embed_dim
HEADS = 4          # encoder_attention_heads
HEAD_DIM = EMBED // HEADS
FFN = 64           # encoder_ffn_embed_dim
TOKENS = BATCH * SEQ
AUG = EMBED + 8    # input feature dim + ones column, padded to a sublane multiple
LN_EPS = 1e-5
NEG_BIG = -1e30    # finite "-inf" for the additive mask (avoids NaN on all-pad rows)


# ------------------------------- kernel ----------------------------------
def encoder_layer_kernel(bias_ref, xa_ref, xT_ref,
                         wq_ref, wkv_ref, wo_ref, w1_ref, w2_ref, vec_ref,
                         out_ref):
    # xa_ref : (B*T, AUG)  = [x | 1 | 0-pad]      (rows = tokens)
    # xT_ref : (AUG, B*T)  = [x^T ; 1 ; 0-pad]    (for the transposed KV projection)
    x_aug = xa_ref[...]
    x = x_aug[:, :EMBED]                              # residual input (prefix lanes)

    # packed small vectors: one (8,128) slab, one DMA
    vec = vec_ref[...]
    bo = vec[0:1, :EMBED]
    ln1_w, ln1_b = vec[1:2, :EMBED], vec[2:3, :EMBED]
    b1 = vec[3:4, :FFN]
    b2 = vec[4:5, :EMBED]
    ln2_w, ln2_b = vec[5:6, :EMBED], vec[6:7, :EMBED]

    def layer_norm(v, w, b):
        mu = jnp.mean(v, axis=-1, keepdims=True)
        var = jnp.mean((v - mu) ** 2, axis=-1, keepdims=True)
        return (v - mu) * jax.lax.rsqrt(var + LN_EPS) * w + b

    # --- fused K|V projection, transposed orientation: (2C, AUG) @ (AUG, BT) ---
    #     bias folded in via the ones row of xT; per-head slices below are
    #     sublane-tile-aligned row slices (multiples of 8).
    kvT = jnp.dot(wkv_ref[...], xT_ref[...], preferred_element_type=jnp.float32)  # (2C, BT)

    bias = bias_ref[...]        # (BT, BT) block-diagonal + key-padding additive bias

    # --- per-head attention with the output projection folded into the loop ---
    acc = jnp.zeros((TOKENS, EMBED), jnp.float32)
    for h in range(HEADS):
        r = h * HEAD_DIM
        # Q: per-head weight indexed on the leading (free) axis; scaling & bias folded.
        q_h = jnp.dot(x_aug, wq_ref[h], preferred_element_type=jnp.float32)    # (BT, D)
        kT_h = kvT[r:r + HEAD_DIM, :]                                          # (D, BT)
        vT_h = kvT[EMBED + r:EMBED + r + HEAD_DIM, :]                          # (D, BT)

        s = jnp.dot(q_h, kT_h, preferred_element_type=jnp.float32)             # (BT, BT)
        s = s + bias
        s = s - jnp.max(s, axis=-1, keepdims=True)
        p = jnp.exp(s)
        p = p * pl.reciprocal(jnp.sum(p, axis=-1, keepdims=True), approx=True)

        # context: contract the key axis of p with the lane axis of vT  -> (BT, D)
        ctx = jax.lax.dot_general(p, vT_h, (((1,), (1,)), ((), ())),
                                  preferred_element_type=jnp.float32)
        # out-projection accumulated in registers (no attn scratch / masked stores)
        acc = acc + jnp.dot(ctx, wo_ref[r:r + HEAD_DIM, :],
                            preferred_element_type=jnp.float32)                # (BT, C)

    # --- residual + post-LN ---
    x1 = layer_norm(x + acc + bo, ln1_w, ln1_b)

    # --- feed-forward + residual + post-LN ---
    h1 = jnp.maximum(
        jnp.dot(x1, w1_ref[...], preferred_element_type=jnp.float32) + b1, 0.0)
    h2 = jnp.dot(h1, w2_ref[...], preferred_element_type=jnp.float32) + b2
    out_ref[...] = layer_norm(x1 + h2, ln2_w, ln2_b).astype(out_ref.dtype)


# ------------------------------- wrapper ----------------------------------
@jax.jit
def transformer_encoder_layer(x, pad_mask, params):
    """x: (B, T, C) f32, pad_mask: (B, T) f32 (1.0 == padded key position)."""
    B, T, C = x.shape
    BT = B * T
    D = HEAD_DIM
    x2 = x.reshape(BT, C)

    # Block-diagonal + key-padding additive bias (built once, outside the kernel):
    # query i may attend to key j iff same batch and key j is not padded.
    bids = jnp.repeat(jnp.arange(B), T)
    allowed = (bids[:, None] == bids[None, :]) & (pad_mask.reshape(-1)[None, :] <= 0.5)
    bias = jnp.where(allowed, 0.0, NEG_BIG).astype(jnp.float32)            # (BT, BT)

    # Augmented inputs: ones column/row folds the projection biases into the matmuls.
    x_aug = jnp.zeros((BT, AUG), jnp.float32)
    x_aug = x_aug.at[:, :C].set(x2)
    x_aug = x_aug.at[:, C].set(1.0)                                        # (BT, AUG)
    xT_aug = jnp.zeros((AUG, BT), jnp.float32)
    xT_aug = xT_aug.at[:C, :].set(x2.T)
    xT_aug = xT_aug.at[C, :].set(1.0)                                      # (AUG, BT)

    scaling = 1.0 / math.sqrt(D)
    # Per-head Q weights (HEADS, AUG, D); attention scaling + bias folded in.
    wq_aug = jnp.zeros((AUG, C), jnp.float32)
    wq_aug = wq_aug.at[:C, :].set(params["wq_t"] * scaling)
    wq_aug = wq_aug.at[C, :].set(params["bq"][0] * scaling)
    wq_heads = wq_aug.reshape(AUG, HEADS, D).transpose(1, 0, 2)            # (H, AUG, D)

    # Fused K|V weight in transposed orientation (out_dims, AUG) with bias column.
    wkv_aug = jnp.zeros((2 * C, AUG), jnp.float32)
    wkv_aug = wkv_aug.at[:C, :C].set(params["wk_t"].T)
    wkv_aug = wkv_aug.at[C:, :C].set(params["wv_t"].T)
    wkv_aug = wkv_aug.at[:C, C].set(params["bk"][0])
    wkv_aug = wkv_aug.at[C:, C].set(params["bv"][0])                       # (2C, AUG)

    # Pack all tiny vector operands into one (8, 128) f32 slab -> single DMA.
    vec = jnp.zeros((8, 128), jnp.float32)
    vec = vec.at[0, :C].set(params["bo"][0])
    vec = vec.at[1, :C].set(params["ln1_w"][0])
    vec = vec.at[2, :C].set(params["ln1_b"][0])
    vec = vec.at[3, :FFN].set(params["b1"][0])
    vec = vec.at[4, :C].set(params["b2"][0])
    vec = vec.at[5, :C].set(params["ln2_w"][0])
    vec = vec.at[6, :C].set(params["ln2_b"][0])

    operands = (bias, x_aug, xT_aug, wq_heads, wkv_aug,
                params["wo_t"], params["w1_t"], params["w2_t"], vec)

    flops = (HEADS * 2 * BT * AUG * D            # per-head Q projections
             + 2 * (2 * C) * AUG * BT            # fused transposed KV projection
             + HEADS * 2 * BT * BT * D * 2       # QK^T and PV
             + HEADS * 2 * BT * D * C            # out-projection
             + 2 * 2 * BT * C * FFN)             # fc1 + fc2
    transcendentals = HEADS * BT * BT + HEADS * BT + 2 * BT
    bytes_accessed = 4 * (sum(int(a.size) for a in operands) + BT * C)

    out = pl.pallas_call(
        encoder_layer_kernel,
        out_shape=jax.ShapeDtypeStruct((BT, C), x.dtype),
        cost_estimate=pl.CostEstimate(flops=int(flops),
                                      transcendentals=int(transcendentals),
                                      bytes_accessed=int(bytes_accessed)),
    )(*operands)
    return out.reshape(B, T, C)


# ------------------------- pure-JAX reference ------------------------------
def reference(x, pad_mask, params):
    hi = jax.lax.Precision.HIGHEST

    def ln(v, w, b):
        mu = v.mean(-1, keepdims=True)
        var = ((v - mu) ** 2).mean(-1, keepdims=True)
        return (v - mu) / jnp.sqrt(var + LN_EPS) * w + b

    B, T, C = x.shape
    scaling = 1.0 / math.sqrt(HEAD_DIM)
    q = (jnp.einsum("btc,cd->btd", x, params["wq_t"], precision=hi) + params["bq"]) * scaling
    k = jnp.einsum("btc,cd->btd", x, params["wk_t"], precision=hi) + params["bk"]
    v = jnp.einsum("btc,cd->btd", x, params["wv_t"], precision=hi) + params["bv"]
    q = q.reshape(B, T, HEADS, HEAD_DIM)
    k = k.reshape(B, T, HEADS, HEAD_DIM)
    v = v.reshape(B, T, HEADS, HEAD_DIM)
    s = jnp.einsum("bqhd,bkhd->bhqk", q, k, precision=hi)
    s = jnp.where(pad_mask[:, None, None, :] > 0.5, -jnp.inf, s)
    p = jax.nn.softmax(s, axis=-1)
    a = jnp.einsum("bhqk,bkhd->bqhd", p, v, precision=hi).reshape(B, T, C)
    a = jnp.einsum("btc,cd->btd", a, params["wo_t"], precision=hi) + params["bo"]
    x1 = ln(x + a, params["ln1_w"], params["ln1_b"])
    h1 = jax.nn.relu(jnp.einsum("btc,cf->btf", x1, params["w1_t"], precision=hi) + params["b1"])
    h2 = jnp.einsum("btf,fc->btc", h1, params["w2_t"], precision=hi) + params["b2"]
    return ln(x1 + h2, params["ln2_w"], params["ln2_b"])


# ------------------------------- params ------------------------------------
def init_params(key):
    ks = jax.random.split(key, 8)
    std = 0.02

    def w(k, shape):
        return jax.random.normal(k, shape, jnp.float32) * std

    C, F = EMBED, FFN
    return {
        # nn.Linear stores (out,in); weights pre-transposed to (in,out) here
        "wq_t": w(ks[0], (C, C)), "bq": jnp.zeros((1, C), jnp.float32),
        "wk_t": w(ks[1], (C, C)), "bk": jnp.zeros((1, C), jnp.float32),
        "wv_t": w(ks[2], (C, C)), "bv": jnp.zeros((1, C), jnp.float32),
        "wo_t": w(ks[3], (C, C)), "bo": jnp.zeros((1, C), jnp.float32),
        "ln1_w": jnp.ones((1, C), jnp.float32), "ln1_b": jnp.zeros((1, C), jnp.float32),
        "w1_t": w(ks[4], (C, F)), "b1": jnp.full((1, F), 0.01, jnp.float32),
        "w2_t": w(ks[5], (F, C)), "b2": jnp.full((1, C), 0.01, jnp.float32),
        "ln2_w": jnp.ones((1, C), jnp.float32), "ln2_b": jnp.zeros((1, C), jnp.float32),
    }


if __name__ == "__main__":
    key = jax.random.PRNGKey(0)
    kx, kp = jax.random.split(key)
    x = jax.random.normal(kx, (BATCH, SEQ, EMBED), jnp.float32)
    # encoder_padding_mask: 1.0 == padded.  Batch 0 unpadded, batch 1 pads last 2.
    pad_mask = jnp.zeros((BATCH, SEQ), jnp.float32)
    pad_mask = pad_mask.at[1, -2:].set(1.0)

    params = init_params(kp)

    out = transformer_encoder_layer(x, pad_mask, params)
    out = jax.block_until_ready(out)

    ref = reference(x, pad_mask, params)
    if not jnp.allclose(out, ref, atol=1e-2, rtol=1e-2):
        raise AssertionError("Pallas output mismatch vs reference")
    # TODO(synk): dropout modules are identity (inference / p=0); attn_mask path unused.
    print("KERNEL_OK")
</pallas_src>

<mosaic_0001>
module attributes {stable_mosaic.version = 11 : i64} {
  func.func @encoder_layer_kernel(%arg0: memref<16x16xf32, #tpu.memory_space<vmem>>, %arg1: memref<16x40xf32, #tpu.memory_space<vmem>>, %arg2: memref<40x16xf32, #tpu.memory_space<vmem>>, %arg3: memref<4x40x8xf32, #tpu.memory_space<vmem>>, %arg4: memref<64x40xf32, #tpu.memory_space<vmem>>, %arg5: memref<32x32xf32, #tpu.memory_space<vmem>>, %arg6: memref<32x64xf32, #tpu.memory_space<vmem>>, %arg7: memref<64x32xf32, #tpu.memory_space<vmem>>, %arg8: memref<8x128xf32, #tpu.memory_space<vmem>>, %arg9: memref<16x32xf32, #tpu.memory_space<vmem>>) attributes {dimension_semantics = [], scalar_prefetch = 0 : i64, scratch_operands = 0 : i64, tpu.core_type = #tpu.core_type<tc>} {
    %c0 = arith.constant 0 : index
    %c0_0 = arith.constant 0 : index
    %0 = vector.load %arg1[%c0, %c0_0] : memref<16x40xf32, #tpu.memory_space<vmem>>, vector<16x40xf32>
    %1 = vector.extract_strided_slice %0 {offsets = [0, 0], sizes = [16, 32], strides = [1, 1]} : vector<16x40xf32> to vector<16x32xf32>
    %c0_1 = arith.constant 0 : index
    %c0_2 = arith.constant 0 : index
    %2 = vector.load %arg8[%c0_1, %c0_2] : memref<8x128xf32, #tpu.memory_space<vmem>>, vector<8x128xf32>
    %3 = vector.extract_strided_slice %2 {offsets = [0, 0], sizes = [1, 32], strides = [1, 1]} : vector<8x128xf32> to vector<1x32xf32>
    %4 = vector.extract_strided_slice %2 {offsets = [1, 0], sizes = [1, 32], strides = [1, 1]} : vector<8x128xf32> to vector<1x32xf32>
    %5 = vector.extract_strided_slice %2 {offsets = [2, 0], sizes = [1, 32], strides = [1, 1]} : vector<8x128xf32> to vector<1x32xf32>
    %6 = vector.extract_strided_slice %2 {offsets = [3, 0], sizes = [1, 64], strides = [1, 1]} : vector<8x128xf32> to vector<1x64xf32>
    %7 = vector.extract_strided_slice %2 {offsets = [4, 0], sizes = [1, 32], strides = [1, 1]} : vector<8x128xf32> to vector<1x32xf32>
    %8 = vector.extract_strided_slice %2 {offsets = [5, 0], sizes = [1, 32], strides = [1, 1]} : vector<8x128xf32> to vector<1x32xf32>
    %9 = vector.extract_strided_slice %2 {offsets = [6, 0], sizes = [1, 32], strides = [1, 1]} : vector<8x128xf32> to vector<1x32xf32>
    %c0_3 = arith.constant 0 : index
    %c0_4 = arith.constant 0 : index
    %10 = vector.load %arg4[%c0_3, %c0_4] : memref<64x40xf32, #tpu.memory_space<vmem>>, vector<64x40xf32>
    %c0_5 = arith.constant 0 : index
    %c0_6 = arith.constant 0 : index
    %11 = vector.load %arg2[%c0_5, %c0_6] : memref<40x16xf32, #tpu.memory_space<vmem>>, vector<40x16xf32>
    %cst = arith.constant dense<0.000000e+00> : vector<64x16xf32>
    %12 = tpu.matmul %10, %11, %cst {dimension_numbers = #tpu.dot_dimension_numbers<[1], [0], [0], [1], [0, 0, 1, 1], [], []>} : vector<64x40xf32>, vector<40x16xf32>, vector<64x16xf32> -> vector<64x16xf32>
    %c0_7 = arith.constant 0 : index
    %c0_8 = arith.constant 0 : index
    %13 = vector.load %arg0[%c0_7, %c0_8] : memref<16x16xf32, #tpu.memory_space<vmem>>, vector<16x16xf32>
    %cst_9 = arith.constant 0.000000e+00 : f32
    %14 = vector.broadcast %cst_9 : f32 to vector<16x32xf32>
    %c0_10 = arith.constant 0 : index
    %c0_11 = arith.constant 0 : index
    %c0_12 = arith.constant 0 : index
    %15 = vector.load %arg3[%c0_10, %c0_11, %c0_12] : memref<4x40x8xf32, #tpu.memory_space<vmem>>, vector<1x40x8xf32>
    %16 = vector.shape_cast %15 : vector<1x40x8xf32> to vector<40x8xf32>
    %cst_13 = arith.constant dense<0.000000e+00> : vector<16x8xf32>
    %17 = tpu.matmul %0, %16, %cst_13 {dimension_numbers = #tpu.dot_dimension_numbers<[1], [0], [0], [1], [0, 0, 1, 1], [], []>} : vector<16x40xf32>, vector<40x8xf32>, vector<16x8xf32> -> vector<16x8xf32>
    %18 = vector.extract_strided_slice %12 {offsets = [0, 0], sizes = [8, 16], strides = [1, 1]} : vector<64x16xf32> to vector<8x16xf32>
    %19 = vector.extract_strided_slice %12 {offsets = [32, 0], sizes = [8, 16], strides = [1, 1]} : vector<64x16xf32> to vector<8x16xf32>
    %cst_14 = arith.constant dense<0.000000e+00> : vector<16x16xf32>
    %20 = tpu.matmul %17, %18, %cst_14 {dimension_numbers = #tpu.dot_dimension_numbers<[1], [0], [0], [1], [0, 0, 1, 1], [], []>} : vector<16x8xf32>, vector<8x16xf32>, vector<16x16xf32> -> vector<16x16xf32>
    %21 = arith.addf %20, %13 : vector<16x16xf32>
    %cst_15 = arith.constant dense<0xFF800000> : vector<16xf32>
    %22 = vector.multi_reduction <maximumf>, %21, %cst_15 [1] : vector<16x16xf32> to vector<16xf32>
    %23 = vector.shape_cast %22 : vector<16xf32> to vector<16x1xf32>
    %24 = vector.broadcast %23 : vector<16x1xf32> to vector<16x16xf32>
    %25 = arith.subf %21, %24 : vector<16x16xf32>
    %26 = math.exp %25 : vector<16x16xf32>
    %cst_16 = arith.constant dense<0.000000e+00> : vector<16xf32>
    %27 = vector.multi_reduction <add>, %26, %cst_16 [1] : vector<16x16xf32> to vector<16xf32>
    %28 = vector.shape_cast %27 : vector<16xf32> to vector<16x1xf32>
    %29 = tpu.reciprocal %28 {approx = true} : vector<16x1xf32> -> vector<16x1xf32>
    %30 = vector.broadcast %29 : vector<16x1xf32> to vector<16x16xf32>
    %31 = arith.mulf %26, %30 : vector<16x16xf32>
    %cst_17 = arith.constant dense<0.000000e+00> : vector<16x8xf32>
    %32 = tpu.matmul %31, %19, %cst_17 {dimension_numbers = #tpu.dot_dimension_numbers<[1], [1], [0], [0], [0, 0, 1, 0], [], []>} : vector<16x16xf32>, vector<8x16xf32>, vector<16x8xf32> -> vector<16x8xf32>
    %c0_18 = arith.constant 0 : index
    %c0_19 = arith.constant 0 : index
    %33 = vector.load %arg5[%c0_18, %c0_19] : memref<32x32xf32, #tpu.memory_space<vmem>>, vector<8x32xf32>
    %cst_20 = arith.constant dense<0.000000e+00> : vector<16x32xf32>
    %34 = tpu.matmul %32, %33, %cst_20 {dimension_numbers = #tpu.dot_dimension_numbers<[1], [0], [0], [1], [0, 0, 1, 1], [], []>} : vector<16x8xf32>, vector<8x32xf32>, vector<16x32xf32> -> vector<16x32xf32>
    %35 = arith.addf %14, %34 : vector<16x32xf32>
    %c1 = arith.constant 1 : index
    %c0_21 = arith.constant 0 : index
    %c0_22 = arith.constant 0 : index
    %36 = vector.load %arg3[%c1, %c0_21, %c0_22] : memref<4x40x8xf32, #tpu.memory_space<vmem>>, vector<1x40x8xf32>
    %37 = vector.shape_cast %36 : vector<1x40x8xf32> to vector<40x8xf32>
    %cst_23 = arith.constant dense<0.000000e+00> : vector<16x8xf32>
    %38 = tpu.matmul %0, %37, %cst_23 {dimension_numbers = #tpu.dot_dimension_numbers<[1], [0], [0], [1], [0, 0, 1, 1], [], []>} : vector<16x40xf32>, vector<40x8xf32>, vector<16x8xf32> -> vector<16x8xf32>
    %39 = vector.extract_strided_slice %12 {offsets = [8, 0], sizes = [8, 16], strides = [1, 1]} : vector<64x16xf32> to vector<8x16xf32>
    %40 = vector.extract_strided_slice %12 {offsets = [40, 0], sizes = [8, 16], strides = [1, 1]} : vector<64x16xf32> to vector<8x16xf32>
    %cst_24 = arith.constant dense<0.000000e+00> : vector<16x16xf32>
    %41 = tpu.matmul %38, %39, %cst_24 {dimension_numbers = #tpu.dot_dimension_numbers<[1], [0], [0], [1], [0, 0, 1, 1], [], []>} : vector<16x8xf32>, vector<8x16xf32>, vector<16x16xf32> -> vector<16x16xf32>
    %42 = arith.addf %41, %13 : vector<16x16xf32>
    %cst_25 = arith.constant dense<0xFF800000> : vector<16xf32>
    %43 = vector.multi_reduction <maximumf>, %42, %cst_25 [1] : vector<16x16xf32> to vector<16xf32>
    %44 = vector.shape_cast %43 : vector<16xf32> to vector<16x1xf32>
    %45 = vector.broadcast %44 : vector<16x1xf32> to vector<16x16xf32>
    %46 = arith.subf %42, %45 : vector<16x16xf32>
    %47 = math.exp %46 : vector<16x16xf32>
    %cst_26 = arith.constant dense<0.000000e+00> : vector<16xf32>
    %48 = vector.multi_reduction <add>, %47, %cst_26 [1] : vector<16x16xf32> to vector<16xf32>
    %49 = vector.shape_cast %48 : vector<16xf32> to vector<16x1xf32>
    %50 = tpu.reciprocal %49 {approx = true} : vector<16x1xf32> -> vector<16x1xf32>
    %51 = vector.broadcast %50 : vector<16x1xf32> to vector<16x16xf32>
    %52 = arith.mulf %47, %51 : vector<16x16xf32>
    %cst_27 = arith.constant dense<0.000000e+00> : vector<16x8xf32>
    %53 = tpu.matmul %52, %40, %cst_27 {dimension_numbers = #tpu.dot_dimension_numbers<[1], [1], [0], [0], [0, 0, 1, 0], [], []>} : vector<16x16xf32>, vector<8x16xf32>, vector<16x8xf32> -> vector<16x8xf32>
    %c8 = arith.constant 8 : index
    %c0_28 = arith.constant 0 : index
    %54 = vector.load %arg5[%c8, %c0_28] : memref<32x32xf32, #tpu.memory_space<vmem>>, vector<8x32xf32>
    %cst_29 = arith.constant dense<0.000000e+00> : vector<16x32xf32>
    %55 = tpu.matmul %53, %54, %cst_29 {dimension_numbers = #tpu.dot_dimension_numbers<[1], [0], [0], [1], [0, 0, 1, 1], [], []>} : vector<16x8xf32>, vector<8x32xf32>, vector<16x32xf32> -> vector<16x32xf32>
    %56 = arith.addf %35, %55 : vector<16x32xf32>
    %c2 = arith.constant 2 : index
    %c0_30 = arith.constant 0 : index
    %c0_31 = arith.constant 0 : index
    %57 = vector.load %arg3[%c2, %c0_30, %c0_31] : memref<4x40x8xf32, #tpu.memory_space<vmem>>, vector<1x40x8xf32>
    %58 = vector.shape_cast %57 : vector<1x40x8xf32> to vector<40x8xf32>
    %cst_32 = arith.constant dense<0.000000e+00> : vector<16x8xf32>
    %59 = tpu.matmul %0, %58, %cst_32 {dimension_numbers = #tpu.dot_dimension_numbers<[1], [0], [0], [1], [0, 0, 1, 1], [], []>} : vector<16x40xf32>, vector<40x8xf32>, vector<16x8xf32> -> vector<16x8xf32>
    %60 = vector.extract_strided_slice %12 {offsets = [16, 0], sizes = [8, 16], strides = [1, 1]} : vector<64x16xf32> to vector<8x16xf32>
    %61 = vector.extract_strided_slice %12 {offsets = [48, 0], sizes = [8, 16], strides = [1, 1]} : vector<64x16xf32> to vector<8x16xf32>
    %cst_33 = arith.constant dense<0.000000e+00> : vector<16x16xf32>
    %62 = tpu.matmul %59, %60, %cst_33 {dimension_numbers = #tpu.dot_dimension_numbers<[1], [0], [0], [1], [0, 0, 1, 1], [], []>} : vector<16x8xf32>, vector<8x16xf32>, vector<16x16xf32> -> vector<16x16xf32>
    %63 = arith.addf %62, %13 : vector<16x16xf32>
    %cst_34 = arith.constant dense<0xFF800000> : vector<16xf32>
    %64 = vector.multi_reduction <maximumf>, %63, %cst_34 [1] : vector<16x16xf32> to vector<16xf32>
    %65 = vector.shape_cast %64 : vector<16xf32> to vector<16x1xf32>
    %66 = vector.broadcast %65 : vector<16x1xf32> to vector<16x16xf32>
    %67 = arith.subf %63, %66 : vector<16x16xf32>
    %68 = math.exp %67 : vector<16x16xf32>
    %cst_35 = arith.constant dense<0.000000e+00> : vector<16xf32>
    %69 = vector.multi_reduction <add>, %68, %cst_35 [1] : vector<16x16xf32> to vector<16xf32>
    %70 = vector.shape_cast %69 : vector<16xf32> to vector<16x1xf32>
    %71 = tpu.reciprocal %70 {approx = true} : vector<16x1xf32> -> vector<16x1xf32>
    %72 = vector.broadcast %71 : vector<16x1xf32> to vector<16x16xf32>
    %73 = arith.mulf %68, %72 : vector<16x16xf32>
    %cst_36 = arith.constant dense<0.000000e+00> : vector<16x8xf32>
    %74 = tpu.matmul %73, %61, %cst_36 {dimension_numbers = #tpu.dot_dimension_numbers<[1], [1], [0], [0], [0, 0, 1, 0], [], []>} : vector<16x16xf32>, vector<8x16xf32>, vector<16x8xf32> -> vector<16x8xf32>
    %c16 = arith.constant 16 : index
    %c0_37 = arith.constant 0 : index
    %75 = vector.load %arg5[%c16, %c0_37] : memref<32x32xf32, #tpu.memory_space<vmem>>, vector<8x32xf32>
    %cst_38 = arith.constant dense<0.000000e+00> : vector<16x32xf32>
    %76 = tpu.matmul %74, %75, %cst_38 {dimension_numbers = #tpu.dot_dimension_numbers<[1], [0], [0], [1], [0, 0, 1, 1], [], []>} : vector<16x8xf32>, vector<8x32xf32>, vector<16x32xf32> -> vector<16x32xf32>
    %77 = arith.addf %56, %76 : vector<16x32xf32>
    %c3 = arith.constant 3 : index
    %c0_39 = arith.constant 0 : index
    %c0_40 = arith.constant 0 : index
    %78 = vector.load %arg3[%c3, %c0_39, %c0_40] : memref<4x40x8xf32, #tpu.memory_space<vmem>>, vector<1x40x8xf32>
    %79 = vector.shape_cast %78 : vector<1x40x8xf32> to vector<40x8xf32>
    %cst_41 = arith.constant dense<0.000000e+00> : vector<16x8xf32>
    %80 = tpu.matmul %0, %79, %cst_41 {dimension_numbers = #tpu.dot_dimension_numbers<[1], [0], [0], [1], [0, 0, 1, 1], [], []>} : vector<16x40xf32>, vector<40x8xf32>, vector<16x8xf32> -> vector<16x8xf32>
    %81 = vector.extract_strided_slice %12 {offsets = [24, 0], sizes = [8, 16], strides = [1, 1]} : vector<64x16xf32> to vector<8x16xf32>
    %82 = vector.extract_strided_slice %12 {offsets = [56, 0], sizes = [8, 16], strides = [1, 1]} : vector<64x16xf32> to vector<8x16xf32>
    %cst_42 = arith.constant dense<0.000000e+00> : vector<16x16xf32>
    %83 = tpu.matmul %80, %81, %cst_42 {dimension_numbers = #tpu.dot_dimension_numbers<[1], [0], [0], [1], [0, 0, 1, 1], [], []>} : vector<16x8xf32>, vector<8x16xf32>, vector<16x16xf32> -> vector<16x16xf32>
    %84 = arith.addf %83, %13 : vector<16x16xf32>
    %cst_43 = arith.constant dense<0xFF800000> : vector<16xf32>
    %85 = vector.multi_reduction <maximumf>, %84, %cst_43 [1] : vector<16x16xf32> to vector<16xf32>
    %86 = vector.shape_cast %85 : vector<16xf32> to vector<16x1xf32>
    %87 = vector.broadcast %86 : vector<16x1xf32> to vector<16x16xf32>
    %88 = arith.subf %84, %87 : vector<16x16xf32>
    %89 = math.exp %88 : vector<16x16xf32>
    %cst_44 = arith.constant dense<0.000000e+00> : vector<16xf32>
    %90 = vector.multi_reduction <add>, %89, %cst_44 [1] : vector<16x16xf32> to vector<16xf32>
    %91 = vector.shape_cast %90 : vector<16xf32> to vector<16x1xf32>
    %92 = tpu.reciprocal %91 {approx = true} : vector<16x1xf32> -> vector<16x1xf32>
    %93 = vector.broadcast %92 : vector<16x1xf32> to vector<16x16xf32>
    %94 = arith.mulf %89, %93 : vector<16x16xf32>
    %cst_45 = arith.constant dense<0.000000e+00> : vector<16x8xf32>
    %95 = tpu.matmul %94, %82, %cst_45 {dimension_numbers = #tpu.dot_dimension_numbers<[1], [1], [0], [0], [0, 0, 1, 0], [], []>} : vector<16x16xf32>, vector<8x16xf32>, vector<16x8xf32> -> vector<16x8xf32>
    %c24 = arith.constant 24 : index
    %c0_46 = arith.constant 0 : index
    %96 = vector.load %arg5[%c24, %c0_46] : memref<32x32xf32, #tpu.memory_space<vmem>>, vector<8x32xf32>
    %cst_47 = arith.constant dense<0.000000e+00> : vector<16x32xf32>
    %97 = tpu.matmul %95, %96, %cst_47 {dimension_numbers = #tpu.dot_dimension_numbers<[1], [0], [0], [1], [0, 0, 1, 1], [], []>} : vector<16x8xf32>, vector<8x32xf32>, vector<16x32xf32> -> vector<16x32xf32>
    %98 = arith.addf %77, %97 : vector<16x32xf32>
    %99 = arith.addf %1, %98 : vector<16x32xf32>
    %100 = vector.broadcast %3 : vector<1x32xf32> to vector<16x32xf32>
    %101 = arith.addf %99, %100 : vector<16x32xf32>
    %cst_48 = arith.constant dense<0.000000e+00> : vector<16xf32>
    %102 = vector.multi_reduction <add>, %101, %cst_48 [1] : vector<16x32xf32> to vector<16xf32>
    %103 = vector.shape_cast %102 : vector<16xf32> to vector<16x1xf32>
    %cst_49 = arith.constant 3.200000e+01 : f32
    %104 = vector.broadcast %cst_49 : f32 to vector<16x1xf32>
    %105 = arith.divf %103, %104 : vector<16x1xf32>
    %106 = vector.broadcast %105 : vector<16x1xf32> to vector<16x32xf32>
    %107 = arith.subf %101, %106 : vector<16x32xf32>
    %108 = arith.mulf %107, %107 : vector<16x32xf32>
    %cst_50 = arith.constant dense<0.000000e+00> : vector<16xf32>
    %109 = vector.multi_reduction <add>, %108, %cst_50 [1] : vector<16x32xf32> to vector<16xf32>
    %110 = vector.shape_cast %109 : vector<16xf32> to vector<16x1xf32>
    %cst_51 = arith.constant 3.200000e+01 : f32
    %111 = vector.broadcast %cst_51 : f32 to vector<16x1xf32>
    %112 = arith.divf %110, %111 : vector<16x1xf32>
    %113 = vector.broadcast %105 : vector<16x1xf32> to vector<16x32xf32>
    %114 = arith.subf %101, %113 : vector<16x32xf32>
    %cst_52 = arith.constant 9.99999974E-6 : f32
    %115 = vector.broadcast %cst_52 : f32 to vector<16x1xf32>
    %116 = arith.addf %112, %115 : vector<16x1xf32>
    %117 = math.rsqrt %116 : vector<16x1xf32>
    %118 = vector.broadcast %117 : vector<16x1xf32> to vector<16x32xf32>
    %119 = arith.mulf %114, %118 : vector<16x32xf32>
    %120 = vector.broadcast %4 : vector<1x32xf32> to vector<16x32xf32>
    %121 = arith.mulf %119, %120 : vector<16x32xf32>
    %122 = vector.broadcast %5 : vector<1x32xf32> to vector<16x32xf32>
    %123 = arith.addf %121, %122 : vector<16x32xf32>
    %c0_53 = arith.constant 0 : index
    %c0_54 = arith.constant 0 : index
    %124 = vector.load %arg6[%c0_53, %c0_54] : memref<32x64xf32, #tpu.memory_space<vmem>>, vector<32x64xf32>
    %cst_55 = arith.constant dense<0.000000e+00> : vector<16x64xf32>
    %125 = tpu.matmul %123, %124, %cst_55 {dimension_numbers = #tpu.dot_dimension_numbers<[1], [0], [0], [1], [0, 0, 1, 1], [], []>} : vector<16x32xf32>, vector<32x64xf32>, vector<16x64xf32> -> vector<16x64xf32>
    %126 = vector.broadcast %6 : vector<1x64xf32> to vector<16x64xf32>
    %127 = arith.addf %125, %126 : vector<16x64xf32>
    %cst_56 = arith.constant 0.000000e+00 : f32
    %128 = vector.broadcast %cst_56 : f32 to vector<16x64xf32>
    %129 = arith.maximumf %127, %128 : vector<16x64xf32>
    %c0_57 = arith.constant 0 : index
    %c0_58 = arith.constant 0 : index
    %130 = vector.load %arg7[%c0_57, %c0_58] : memref<64x32xf32, #tpu.memory_space<vmem>>, vector<64x32xf32>
    %cst_59 = arith.constant dense<0.000000e+00> : vector<16x32xf32>
    %131 = tpu.matmul %129, %130, %cst_59 {dimension_numbers = #tpu.dot_dimension_numbers<[1], [0], [0], [1], [0, 0, 1, 1], [], []>} : vector<16x64xf32>, vector<64x32xf32>, vector<16x32xf32> -> vector<16x32xf32>
    %132 = vector.broadcast %7 : vector<1x32xf32> to vector<16x32xf32>
    %133 = arith.addf %131, %132 : vector<16x32xf32>
    %134 = arith.addf %123, %133 : vector<16x32xf32>
    %cst_60 = arith.constant dense<0.000000e+00> : vector<16xf32>
    %135 = vector.multi_reduction <add>, %134, %cst_60 [1] : vector<16x32xf32> to vector<16xf32>
    %136 = vector.shape_cast %135 : vector<16xf32> to vector<16x1xf32>
    %cst_61 = arith.constant 3.200000e+01 : f32
    %137 = vector.broadcast %cst_61 : f32 to vector<16x1xf32>
    %138 = arith.divf %136, %137 : vector<16x1xf32>
    %139 = vector.broadcast %138 : vector<16x1xf32> to vector<16x32xf32>
    %140 = arith.subf %134, %139 : vector<16x32xf32>
    %141 = arith.mulf %140, %140 : vector<16x32xf32>
    %cst_62 = arith.constant dense<0.000000e+00> : vector<16xf32>
    %142 = vector.multi_reduction <add>, %141, %cst_62 [1] : vector<16x32xf32> to vector<16xf32>
    %143 = vector.shape_cast %142 : vector<16xf32> to vector<16x1xf32>
    %cst_63 = arith.constant 3.200000e+01 : f32
    %144 = vector.broadcast %cst_63 : f32 to vector<16x1xf32>
    %145 = arith.divf %143, %144 : vector<16x1xf32>
    %146 = vector.broadcast %138 : vector<16x1xf32> to vector<16x32xf32>
    %147 = arith.subf %134, %146 : vector<16x32xf32>
    %cst_64 = arith.constant 9.99999974E-6 : f32
    %148 = vector.broadcast %cst_64 : f32 to vector<16x1xf32>
    %149 = arith.addf %145, %148 : vector<16x1xf32>
    %150 = math.rsqrt %149 : vector<16x1xf32>
    %151 = vector.broadcast %150 : vector<16x1xf32> to vector<16x32xf32>
    %152 = arith.mulf %147, %151 : vector<16x32xf32>
    %153 = vector.broadcast %8 : vector<1x32xf32> to vector<16x32xf32>
    %154 = arith.mulf %152, %153 : vector<16x32xf32>
    %155 = vector.broadcast %9 : vector<1x32xf32> to vector<16x32xf32>
    %156 = arith.addf %154, %155 : vector<16x32xf32>
    %c0_65 = arith.constant 0 : index
    %c0_66 = arith.constant 0 : index
    %157 = vector.load %arg9[%c0_65, %c0_66] : memref<16x32xf32, #tpu.memory_space<vmem>>, vector<16x32xf32>
    tpu.vector_store %arg9[%c0_65, %c0_66], %156 {strides = array<i32>} : memref<16x32xf32, #tpu.memory_space<vmem>>, vector<16x32xf32>,
    return
  }
}

</mosaic_0001>

<bundles_post_ra>
// kernel: eq.8
= control target key start
LH: loop header
LB: loop body
LE: loop exit
PB: predicated region body
PF: predicated region fallthrough
CT: control target
= control target key end

     0   :  { %vm7_vm0 = vcmask 64512   ;;  %vm13_vm1 = vcmask 130112   ;;  %s39_s0 = inlined_call_operand.vmem [shape: s32[2,8], index: 0, kind: input, shape index: {}]   ;;  %s40_s1 = inlined_call_operand.vmem [shape: s32[16], index: 1, kind: output, shape index: {}]  }
   0x1   :  { %v4_v0 = vld [vmem:[%s39_s0] sm:$0x3]  ;;  %s22_s0 = smov 8  }
   0x2   :  { %5 = vst [vmem:[#allocation1] sm:$0x3] %v4_v0 }
   0x9   :  { %v10_v1 = vld [vmem:[#allocation1 + $0x1] sm:$0x1]   ;;  %v6_v2 = vld [vmem:[#allocation1] sm:$0x1]  }
   0xa   :  { %11 = vrot.lane.b32.xlu0 %v10_v1, %s22_s0  ;;  %8 = vst.msk [vmem:[#allocation0] sm:$0x1] %vm7_vm0, %v6_v2  }
  0x7c   :  { %v12_v3 = vpop.permute.xlu0 %11  }
  0x7d   :  { %14 = vst.msk [vmem:[#allocation0] sm:$0x1] %vm13_vm1, %v12_v3  }
  0x84   :  { %v18_v4 = vld [vmem:[#allocation0] sm:$0x1] }
  0x85   :  { %20 = vst [vmem:[%s40_s1] sm:$0x1] %v18_v4 }

// kernel: transformer_encoder_layer.1
= control target key start
LH: loop header
LB: loop body
LE: loop exit
PB: predicated region body
PF: predicated region fallthrough
CT: control target
= control target key end

     0   :  { %vm49_vm0 = vcmask 326656   ;;  %s2717_s0 = inlined_call_operand.vmem [shape: f32[16,16], index: 0, kind: input, shape index: {}]   ;;  %s2718_s1 = inlined_call_operand.vmem [shape: f32[16,40], index: 1, kind: input, shape index: {}]   ;;  %s2719_s2 = inlined_call_operand.vmem [shape: f32[40,16], index: 2, kind: input, shape index: {}]   ;;  %s2720_s3 = inlined_call_operand.vmem [shape: f32[4,40,8], index: 3, kind: input, shape index: {}]   ;;  %s2721_s4 = inlined_call_operand.vmem [shape: f32[64,40], index: 4, kind: input, shape index: {}]   ;;  %s2722_s5 = inlined_call_operand.vmem [shape: f32[32,32], index: 5, kind: input, shape index: {}]   ;;  %s2723_s6 = inlined_call_operand.vmem [shape: f32[32,64], index: 6, kind: input, shape index: {}]   ;;  %s2724_s7 = inlined_call_operand.vmem [shape: f32[64,32], index: 7, kind: input, shape index: {}]   ;;  %s2725_s8 = inlined_call_operand.vmem [shape: f32[8,128], index: 8, kind: input, shape index: {}]   ;;  %s2726_s9 = inlined_call_operand.hbm [shape: f32[16,32], index: 9, kind: output, shape index: {}]  }
   0x1   :  { %v44_v0 = vld [vmem:[%s2719_s2] sm:$0xff]  ;;  %v45_v1 = vld [vmem:[%s2719_s2 + $0x8] sm:$0xff]  ;;  %v46_v5 = vld [vmem:[%s2719_s2 + $0x10] sm:$0xff] }
   0x2   :  { %v181_v2 = vld [vmem:[%s2720_s3] sm:$0xff]  ;;  %v2203_v3 = vpack.c.bf16 %v45_v1, %v44_v0  ;;  %v182_v4 = vld [vmem:[%s2720_s3 + $0x8] sm:$0xff]  ;;  %v47_v6 = vld [vmem:[%s2719_s2 + $0x18] sm:$0xff] }
   0x3   :  { %v2211_v7 = vpack.c.bf16 %v182_v4, %v181_v2  ;;  %v2207_v8 = vpack.c.bf16 %v47_v6, %v46_v5  ;;  %v183_v9 = vld [vmem:[%s2720_s3 + $0x10] sm:$0xff]  ;;  %v184_v10 = vld [vmem:[%s2720_s3 + $0x18] sm:$0xff]  ;;  %v36_v12 = vld [vmem:[%s2721_s4] sm:$0xff] }
   0x4   :  { %2204 = vmatprep.subr.bf16.mxu0 %v2203_v3  ;;  %v2215_v11 = vpack.c.bf16 %v184_v10, %v183_v9  ;;  %v2423_v13 = vld [vmem:[%s2718_s1] sm:$0xff]  ;;  %2049 = vmatprep.mubr.msk.f32.mxu0 %vm49_vm0, %v36_v12 }
   0x5   :  { %2206 = vmatpush3.bf16.msra.mxu0 %v2203_v3  ;;  %2212 = vmatprep.subr.bf16.mxu1 %v2211_v7  ;;  %v48_v14 = vld [vmem:[%s2719_s2 + $0x20] sm:$0xff] }
   0x6   :  { %2214 = vmatpush3.bf16.msra.mxu1 %v2211_v7  ;;  %2208 = vmatprep.subr.bf16.mxu0 %v2207_v8 }
   0x7   :  { %2216 = vmatprep.subr.bf16.mxu1 %v2215_v11 }
   0x8   :  { %14 = vsyncpa [#allocation3], 0  ;;  %v185_v15 = vld [vmem:[%s2720_s3 + $0x20] sm:$0xff]  ;;  %2071 = vmatprep.mubr.msk.f32.mxu1 %vm49_vm0, %v2423_v13  ;;  %v37_v16 = vld [vmem:[%s2721_s4 + $0x8] sm:$0xff]  ;;  %vm267_vm1 = vcmask 64512   ;;  %vm349_vm2 = vcmask 130048  }
   0x9   :  { %2210 = vmatpush3.bf16.msra.mxu0 %v2207_v8  ;;  %v2440_v17 = vld [vmem:[%s2718_s1 + $0x8] sm:$0xff]  ;;  %v38_v18 = vld [vmem:[%s2721_s4 + $0x10] sm:$0xff]  ;;  %v39_v19 = vld [vmem:[%s2721_s4 + $0x18] sm:$0xff]  ;;  %vm1600_vm3 = vcmask 261120   ;;  %vm1743_vm4 = vcmask 523264  }
   0xa   :  { %2218 = vmatpush3.bf16.msra.mxu1 %v2215_v11  ;;  %2047 = vmatprep.subr.mxu0 %v48_v14  ;;  %v40_v20 = vld [vmem:[%s2721_s4 + $0x20] sm:$0xff]  ;;  %v41_v21 = vld [vmem:[%s2721_s4 + $0x28] sm:$0xff]  ;;  %v1899_v31 = vld [vmem:[%s2720_s3 + $0x30] sm:$0xff] }
   0xb   :  { %2069 = vmatprep.subr.mxu1 %v185_v15  ;;  %v1898_v30 = vld [vmem:[%s2720_s3 + $0x28] sm:$0xff]  ;;  %v1900_v32 = vld [vmem:[%s2720_s3 + $0x38] sm:$0xff]  ;;  %v1901_v34 = vld [vmem:[%s2720_s3 + $0x40] sm:$0xff] }
   0xc   :  { %v2219_v33 = vpack.c.bf16 %v1899_v31, %v1898_v30  ;;  %v42_v35 = vld [vmem:[%s2721_s4 + $0x30] sm:$0xff]  ;;  %v43_v36 = vld [vmem:[%s2721_s4 + $0x38] sm:$0xff]  ;;  %v2223_v37 = vpack.c.bf16 %v1901_v34, %v1900_v32  ;;  %v1902_v38 = vld [vmem:[%s2720_s3 + $0x48] sm:$0xff] }
   0xd   :  { %2048 = vmatpush3.msra.mxu0 %v48_v14  ;;  %v2504_v39 = vld [vmem:[%s2717_s0] sm:$0xff]  ;;  %v2509_v41 = vld [vmem:[%s2717_s0 + $0x8] sm:$0xff]  ;;  %v1914_v32 = vld [vmem:[%s2720_s3 + $0x50] sm:$0xff] }
   0xe   :  { %2050 = vmatmul.mubr.msk.f32.vlgmr.msra.gmra.mrb[0].mxu0 %vm49_vm0, %v37_v16  ;;  %2070 = vmatpush3.msra.mxu1 %v185_v15  ;;  %v456_v57 = vld [vmem:[%s2722_s5] sm:$0xff]  ;;  %v725_v31 = vld [vmem:[%s2722_s5 + $0x8] sm:$0xff] }
   0xf   :  { %2072 = vmatmul.mubr.msk.f32.vlgmr.msra.gmra.mrb[0].mxu1 %vm49_vm0, %v2440_v17  ;;  %2052 = vmatprep.mubr.msk.f32.mxu0 %vm49_vm0, %v38_v18 }
  0x10   :  { %2220 = vmatprep.subr.bf16.mxu0 %v2219_v33 }
  0x11   :  { %2222 = vmatpush3.bf16.msra.mxu0 %v2219_v33  ;;  %v1915_v33 = vld [vmem:[%s2720_s3 + $0x58] sm:$0xff] }
  0x12   :  { %2053 = vmatmul.mubr.msk.f32.gmra.mrb[2].mxu0 %vm49_vm0, %v39_v19  ;;  %2224 = vmatprep.subr.bf16.mxu0 %v2223_v37  ;;  %v2227_v34 = vpack.c.bf16 %v1915_v33, %v1914_v32 }
  0x13   :  { %2055 = vmatprep.mubr.msk.f32.mxu0 %vm49_vm0, %v40_v20 }
  0x15   :  { %2226 = vmatpush3.bf16.msra.mxu0 %v2223_v37 }
  0x16   :  { %2056 = vmatmul.mubr.msk.f32.gmra.mrb[4].mxu0 %vm49_vm0, %v41_v21  ;;  %2092 = vmatprep.subr.mxu0 %v1902_v38 }
  0x17   :  { %2058 = vmatprep.mubr.msk.f32.mxu0 %vm49_vm0, %v42_v35  ;;  %v1916_v35 = vld [vmem:[%s2720_s3 + $0x60] sm:$0xff] }
  0x19   :  { %2093 = vmatpush3.msra.mxu0 %v1902_v38 }
  0x1a   :  { %2059 = vmatmul.mubr.msk.f32.gmra.mrb[6].mxu0 %vm49_vm0, %v43_v36  ;;  %2112 = vmatprep.subr.mxu0 %v456_v57  ;;  %v1917_v36 = vld [vmem:[%s2720_s3 + $0x68] sm:$0xff] }
  0x1b   :  { %2094 = vmatprep.mubr.msk.f32.mxu0 %vm49_vm0, %v2423_v13 }
  0x1e   :  { %2095 = vmatmul.mubr.msk.f32.vlgmr.msra.gmra.mrb[8].mxu0 %vm49_vm0, %v2440_v17 }
  0x1f   :  { %2113 = vmatpush3.msra.mxu0 %v456_v57 }
  0xe1   :  { %v2461_v22 = vpop.f32.mrb[0].mxu0 }
  0xe2   :  { %v140_v23 = vpop.f32.mrb[1].mxu0  ;;  %v2073_v24 = vpop.f32.mrb[0].mxu1 }
  0xe3   :  { %v258_v25 = vpop.f32.mrb[1].mxu1  ;;  %2074 = vmatprep.subr.mxu1 %v140_v23 }
  0xe4   :  { %2075 = vmatpush3.msra.mxu1 %v140_v23  ;;  %2076 = vmatprep.mubr.msk.f32.mxu1 %vm267_vm1, %v258_v25 }
  0xe5   :  { %2077 = vmatmul.mubr.msk.f32.vlgmr.msra.gmra.mrb[2].mxu1 %vm267_vm1, %v2073_v24  ;;  %v2465_v26 = vpop.f32.mrb[2].mxu0 }
  0xe6   :  { %v2467_v27 = vpop.f32.mrb[3].mxu0 }
  0xe7   :  { %2130 = vmatprep.subr.mxu0 %v2467_v27 }
  0xe9   :  { %v2469_v28 = vpop.f32.mrb[4].mxu0 }
  0xea   :  { %v160_v29 = vpop.f32.mrb[5].mxu0 }
  0xeb   :  { %2079 = vmatprep.subr.msk.mxu1 %vm349_vm2, %v160_v29 }
  0xec   :  { %2080 = vmatpush3.xpose.msk.msra.mxu1 %vm349_vm2, %v160_v29 }
  0xed   :  { %2097 = vmatprep.subr.mxu1 %v2461_v22  ;;  %v2521_v58 = vpop.f32.mrb[6].mxu0 }
  0xee   :  { %v2523_v59 = vpop.f32.mrb[7].mxu0 }
  0xf1   :  { %v2096_v60 = vpop.f32.mrb[8].mxu0 }
  0xf2   :  { %v529_v61 = vpop.f32.mrb[9].mxu0 }
 0x1b8   :  { %v2078_v40 = vpop.f32.mrb[2].mxu1 }
 0x1b9   :  { %v340_v42 = vpop.f32.mrb[3].mxu1  ;;  %v346_v44 = vadd.f32 %v2078_v40, %v2509_v41  ;;  %v2231_v40 = vpack.c.bf16 %v1917_v36, %v1916_v35 }
 0x1ba   :  { %v341_v43 = vadd.f32 %v340_v42, %v2504_v39  ;;  %v1918_v42 = vld [vmem:[%s2720_s3 + $0x70] sm:$0xff] }
 0x1bb   :  { %v353_v46 = vsel %vm349_vm2, %v346_v44, -inf }
 0x1bc   :  { %v350_v45 = vsel %vm349_vm2, %v341_v43, -inf }
 0x1bd   :  { %351 = vmax.xlane.f32.xlu0 %v350_v45 }
 0x1c1   :  { %354 = vmax.xlane.f32.xlu0 %v353_v46 }
 0x24a   :  { %v352_v47 = vpop.xlane.xlu0 %351 }
 0x24b   :  { %v356_v48 = vsub.f32 %v341_v43, %v352_v47  ;;  %v1156_v43 = vld [vmem:[%s2722_s5 + $0x10] sm:$0xff] }
 0x24d   :  { %v358_v49 = vmul.f32 1.442695, %v356_v48 }
 0x24e   :  { %v355_v50 = vpop.xlane.xlu0 %354 }
 0x24f   :  { %2276 = vpow2.f32 %v358_v49  ;;  %v357_v51 = vsub.f32 %v346_v44, %v355_v50 }
 0x251   :  { %v360_v52 = vmul.f32 1.442695, %v357_v51 }
 0x253   :  { %2278 = vpow2.f32 %v360_v52 }
 0x259   :  { %v2277_v53 = vpop.eup %2276 }
 0x25a   :  { %v362_v54 = vsel %vm349_vm2, %v2277_v53, 0.0 }
 0x25b   :  { %363 = vadd.xlane.f32.xlu1 %v362_v54 }
 0x25d   :  { %v2279_v55 = vpop.eup %2278 }
 0x25e   :  { %v365_v56 = vsel %vm349_vm2, %v2279_v55, 0.0 }
 0x25f   :  { %366 = vadd.xlane.f32.xlu1 %v365_v56 }
 0x2e8   :  { %v364_v62 = vpop.xlane.xlu1 %363 }
 0x2e9   :  { %2280 = vrcp.f32 %v364_v62 }
 0x2ec   :  { %v367_v63 = vpop.xlane.xlu1 %366 }
 0x2ed   :  { %2282 = vrcp.f32 %v367_v63 }
 0x2f3   :  { %v2281_v0 = vpop.eup %2280 }
 0x2f4   :  { %v370_v1 = vmul.f32 %v2281_v0, %v2277_v53 }
 0x2f6   :  { %2081 = vmatprep.mubr.msk.f32.mxu1 %vm349_vm2, %v370_v1  ;;  %v1928_v1 = vld [vmem:[%s2720_s3 + $0x78] sm:$0xff] }
 0x2f7   :  { %v2283_v2 = vpop.eup %2282 }
 0x2f8   :  { %v371_v3 = vmul.f32 %v2283_v2, %v2279_v55  ;;  %v1929_v2 = vld [vmem:[%s2720_s3 + $0x80] sm:$0xff] }
 0x2fa   :  { %2082 = vmatmul.mubr.msk.f32.vlgmr.msra.gmra.mrb[4].mxu1 %vm349_vm2, %v371_v3  ;;  %v2235_v3 = vpack.c.bf16 %v1929_v2, %v1928_v1 }
 0x2fb   :  { %2098 = vmatpush3.msra.mxu1 %v2461_v22  ;;  %2099 = vmatprep.mubr.msk.f32.mxu1 %vm267_vm1, %v529_v61 }
 0x2fc   :  { %2102 = vmatprep.subr.msk.mxu1 %vm349_vm2, %v2469_v28 }
 0x2fe   :  { %2100 = vmatmul.mubr.msk.f32.vlgmr.msra.gmra.mrb[6].mxu1 %vm267_vm1, %v2096_v60 }
 0x302   :  { %2103 = vmatpush3.xpose.msk.msra.mxu1 %vm349_vm2, %v2469_v28 }
 0x303   :  { %2107 = vmatprep.subr.mxu1 %v725_v31 }
 0x3cd   :  { %v2083_v4 = vpop.f32.mrb[4].mxu1 }
 0x3ce   :  { %v447_v5 = vpop.f32.mrb[5].mxu1 }
 0x3cf   :  { %2114 = vmatprep.mubr.msk.f32.mxu0 %vm267_vm1, %v447_v5 }
 0x3d0   :  { %2115 = vmatmul.mubr.msk.f32.vlgmr.msra.gmra.mrb[10].mxu0 %vm267_vm1, %v2083_v4 }
 0x3d1   :  { %2131 = vmatpush3.msra.mxu0 %v2467_v27  ;;  %v2101_v6 = vpop.f32.mrb[6].mxu1 }
 0x3d2   :  { %v616_v7 = vadd.f32 %v2101_v6, %v2509_v41  ;;  %v610_v8 = vpop.f32.mrb[7].mxu1  ;;  %2140 = vmatprep.subr.mxu0 %v1156_v43 }
 0x3d3   :  { %v611_v9 = vadd.f32 %v610_v8, %v2504_v39  ;;  %v1931_v8 = vld [vmem:[%s2720_s3 + $0x90] sm:$0xff] }
 0x3d4   :  { %v622_v10 = vsel %vm349_vm2, %v616_v7, -inf }
 0x3d5   :  { %623 = vmax.xlane.f32.xlu1 %v622_v10  ;;  %v619_v11 = vsel %vm349_vm2, %v611_v9, -inf }
 0x3d6   :  { %620 = vmax.xlane.f32.xlu0 %v619_v11 }
 0x462   :  { %v624_v12 = vpop.xlane.xlu1 %623 }
 0x463   :  { %v626_v14 = vsub.f32 %v616_v7, %v624_v12  ;;  %v621_v15 = vpop.xlane.xlu0 %620  ;;  %v1930_v7 = vld [vmem:[%s2720_s3 + $0x88] sm:$0xff] }
 0x464   :  { %v625_v16 = vsub.f32 %v611_v9, %v621_v15  ;;  %v2239_v12 = vpack.c.bf16 %v1931_v8, %v1930_v7  ;;  %v1642_v7 = vld [vmem:[%s2723_s6 + $0x10] sm:$0xff]  ;;  %v1643_v8 = vld [vmem:[%s2723_s6 + $0x18] sm:$0xff] }
 0x465   :  { %v629_v18 = vmul.f32 1.442695, %v626_v14  ;;  %v1932_v14 = vld [vmem:[%s2720_s3 + $0x98] sm:$0xff] }
 0x466   :  { %v627_v19 = vmul.f32 1.442695, %v625_v16 }
 0x467   :  { %2284 = vpow2.f32 %v629_v18 }
 0x468   :  { %2286 = vpow2.f32 %v627_v19 }
 0x471   :  { %v2285_v20 = vpop.eup %2284 }
 0x472   :  { %v2287_v21 = vpop.eup %2286  ;;  %v634_v22 = vsel %vm349_vm2, %v2285_v20, 0.0 }
 0x473   :  { %635 = vadd.xlane.f32.xlu1 %v634_v22  ;;  %v631_v23 = vsel %vm349_vm2, %v2287_v21, 0.0 }
 0x474   :  { %632 = vadd.xlane.f32.xlu0 %v631_v23 }
 0x500   :  { %v636_v24 = vpop.xlane.xlu1 %635 }
 0x501   :  { %2288 = vrcp.f32 %v636_v24  ;;  %v633_v25 = vpop.xlane.xlu0 %632 }
 0x502   :  { %2290 = vrcp.f32 %v633_v25 }
 0x50b   :  { %v2289_v27 = vpop.eup %2288 }
 0x50c   :  { %v2291_v28 = vpop.eup %2290  ;;  %v640_v30 = vmul.f32 %v2289_v27, %v2285_v20 }
 0x50d   :  { %v639_v29 = vmul.f32 %v2291_v28, %v2287_v21 }
 0x50f   :  { %2104 = vmatprep.mubr.msk.f32.mxu1 %vm349_vm2, %v639_v29 }
 0x510   :  { %2105 = vmatmul.mubr.msk.f32.vlgmr.msra.gmra.mrb[8].mxu1 %vm349_vm2, %v640_v30 }
 0x511   :  { %2108 = vmatpush3.msra.mxu1 %v725_v31 }
 0x512   :  { %2228 = vmatprep.subr.bf16.mxu1 %v2227_v34 }
 0x5e3   :  { %v2106_v37 = vpop.f32.mrb[8].mxu1 }
 0x5e4   :  { %v716_v38 = vpop.f32.mrb[9].mxu1 }
 0x5e5   :  { %2109 = vmatprep.mubr.msk.f32.mxu1 %vm267_vm1, %v716_v38 }
 0x5e6   :  { %2110 = vmatmul.mubr.msk.f32.vlgmr.msra.gmra.mrb[10].mxu1 %vm267_vm1, %v2106_v37 }
 0x5e7   :  { %2230 = vmatpush3.bf16.msra.mxu1 %v2227_v34  ;;  %2127 = vmatprep.mubr.msk.f32.mxu1 %vm49_vm0, %v2423_v13 }
 0x5e8   :  { %2232 = vmatprep.subr.bf16.mxu1 %v2231_v40 }
 0x5eb   :  { %2234 = vmatpush3.bf16.msra.mxu1 %v2231_v40  ;;  %v1508_v40 = vld [vmem:[%s2722_s5 + $0x18] sm:$0xff] }
 0x5ec   :  { %2125 = vmatprep.subr.mxu1 %v1918_v42 }
 0x5ef   :  { %2126 = vmatpush3.msra.mxu1 %v1918_v42 }
 0x5f0   :  { %2128 = vmatmul.mubr.msk.f32.vlgmr.msra.gmra.mrb[12].mxu1 %vm49_vm0, %v2440_v17  ;;  %2135 = vmatprep.subr.msk.mxu1 %vm349_vm2, %v2523_v59 }
 0x5f6   :  { %2136 = vmatpush3.xpose.msk.msra.mxu1 %vm349_vm2, %v2523_v59 }
 0x5f7   :  { %2236 = vmatprep.subr.bf16.mxu1 %v2235_v3 }
 0x6b9   :  { %v2576_v44 = vpop.f32.mrb[10].mxu1 }
 0x6ba   :  { %v2578_v45 = vpop.f32.mrb[11].mxu1 }
 0x6c3   :  { %v2129_v46 = vpop.f32.mrb[12].mxu1 }
 0x6c4   :  { %v960_v47 = vpop.f32.mrb[13].mxu1 }
 0x6c5   :  { %2132 = vmatprep.mubr.msk.f32.mxu0 %vm267_vm1, %v960_v47 }
 0x6c6   :  { %2133 = vmatmul.mubr.msk.f32.vlgmr.msra.gmra.mrb[12].mxu0 %vm267_vm1, %v2129_v46  ;;  %v1594_v46 = vlaneseq }
 0x6c7   :  { %2141 = vmatpush3.msra.mxu0 %v1156_v43 }
 0x6c8   :  { %2158 = vmatprep.subr.mxu0 %v2465_v26  ;;  %v2632_v47 = vshrl.u32 %v1594_v46, 7 }
 0x799   :  { %v2134_v48 = vpop.f32.mrb[12].mxu0 }
 0x79a   :  { %v1047_v49 = vadd.f32 %v2134_v48, %v2509_v41  ;;  %v1041_v50 = vpop.f32.mrb[13].mxu0  ;;  %v1596_v48 = vsub.s32 0, %v2632_v47 }
 0x79b   :  { %v1042_v51 = vadd.f32 %v1041_v50, %v2504_v39 }
 0x79c   :  { %v1053_v52 = vsel %vm349_vm2, %v1047_v49, -inf }
 0x79d   :  { %1054 = vmax.xlane.f32.xlu1 %v1053_v52  ;;  %v1050_v53 = vsel %vm349_vm2, %v1042_v51, -inf }
 0x79e   :  { %1051 = vmax.xlane.f32.xlu0 %v1050_v53 }
 0x82a   :  { %v1055_v54 = vpop.xlane.xlu1 %1054 }
 0x82b   :  { %v1057_v55 = vsub.f32 %v1047_v49, %v1055_v54  ;;  %v1052_v56 = vpop.xlane.xlu0 %1051  ;;  %v2638_v49 = vld [vmem:[%s2725_s8] sm:$0xff] }
 0x82c   :  { %v1056_v57 = vsub.f32 %v1042_v51, %v1052_v56  ;;  %v1597_v53 = vrot.slane %v2638_v49, %v1596_v48 }
 0x82d   :  { %v1060_v59 = vmul.f32 1.442695, %v1057_v55 }
 0x82e   :  { %v1058_v60 = vmul.f32 1.442695, %v1056_v57 }
 0x82f   :  { %2292 = vpow2.f32 %v1060_v59 }
 0x830   :  { %2294 = vpow2.f32 %v1058_v60 }
 0x839   :  { %v2293_v61 = vpop.eup %2292 }
 0x83a   :  { %v2295_v62 = vpop.eup %2294  ;;  %v1065_v63 = vsel %vm349_vm2, %v2293_v61, 0.0 }
 0x83b   :  { %1066 = vadd.xlane.f32.xlu1 %v1065_v63  ;;  %v1062_v0 = vsel %vm349_vm2, %v2295_v62, 0.0 }
 0x83c   :  { %1063 = vadd.xlane.f32.xlu0 %v1062_v0 }
 0x8c8   :  { %v1067_v4 = vpop.xlane.xlu1 %1066 }
 0x8c9   :  { %2296 = vrcp.f32 %v1067_v4  ;;  %v1064_v5 = vpop.xlane.xlu0 %1063  ;;  %v1640_v4 = vld [vmem:[%s2723_s6] sm:$0xff] }
 0x8ca   :  { %2298 = vrcp.f32 %v1064_v5  ;;  %v1641_v5 = vld [vmem:[%s2723_s6 + $0x8] sm:$0xff] }
 0x8d3   :  { %v2297_v6 = vpop.eup %2296 }
 0x8d4   :  { %v2299_v9 = vpop.eup %2298  ;;  %v1071_v11 = vmul.f32 %v2297_v6, %v2293_v61  ;;  %v2243_v6 = vpack.c.bf16 %v1641_v5, %v1640_v4 }
 0x8d5   :  { %v1070_v10 = vmul.f32 %v2299_v9, %v2295_v62  ;;  %v2247_v9 = vpack.c.bf16 %v1643_v8, %v1642_v7 }
 0x8d7   :  { %2137 = vmatprep.mubr.msk.f32.mxu1 %vm349_vm2, %v1070_v10  ;;  %v1731_v10 = vld [vmem:[%s2724_s7] sm:$0xff] }
 0x8d8   :  { %2138 = vmatmul.mubr.msk.f32.vlgmr.msra.gmra.mrb[14].mxu1 %vm349_vm2, %v1071_v11  ;;  %v1732_v11 = vld [vmem:[%s2724_s7 + $0x8] sm:$0xff] }
 0x8d9   :  { %2238 = vmatpush3.bf16.msra.mxu1 %v2235_v3  ;;  %2155 = vmatprep.mubr.msk.f32.mxu1 %vm49_vm0, %v2423_v13 }
 0x8da   :  { %2240 = vmatprep.subr.bf16.mxu1 %v2239_v12 }
 0x8dd   :  { %2242 = vmatpush3.bf16.msra.mxu1 %v2239_v12  ;;  %v1733_v12 = vld [vmem:[%s2724_s7 + $0x10] sm:$0xff] }
 0x8de   :  { %2153 = vmatprep.subr.mxu1 %v1932_v14 }
 0x8e1   :  { %2154 = vmatpush3.msra.mxu1 %v1932_v14  ;;  %v2251_v14 = vpack.c.bf16 %v1732_v11, %v1731_v10 }
 0x8e2   :  { %2156 = vmatmul.mubr.msk.f32.vlgmr.msra.gmra.mrb[16].mxu1 %vm49_vm0, %v2440_v17  ;;  %2244 = vmatprep.subr.bf16.mxu1 %v2243_v6 }
 0x8e3   :  { %2246 = vmatpush3.bf16.msra.mxu1 %v2243_v6 }
 0x8e4   :  { %2248 = vmatprep.subr.bf16.mxu1 %v2247_v9 }
 0x8e7   :  { %2250 = vmatpush3.bf16.msra.mxu1 %v2247_v9 }
 0x9ab   :  { %v2139_v15 = vpop.f32.mrb[14].mxu1 }
 0x9ac   :  { %v1147_v16 = vpop.f32.mrb[15].mxu1 }
 0x9ad   :  { %2142 = vmatprep.mubr.msk.f32.mxu0 %vm267_vm1, %v1147_v16 }
 0x9ae   :  { %2143 = vmatmul.mubr.msk.f32.vlgmr.msra.gmra.mrb[10].mxu0 %vm267_vm1, %v2139_v15  ;;  %v1734_v15 = vld [vmem:[%s2724_s7 + $0x18] sm:$0xff] }
 0x9af   :  { %2159 = vmatpush3.msra.mxu0 %v2465_v26  ;;  %v2255_v16 = vpack.c.bf16 %v1734_v15, %v1733_v12  ;;  %v1855_v12 = vsub.s32 5, %v2632_v47 }
 0x9b0   :  { %2163 = vmatprep.subr.msk.mxu0 %vm349_vm2, %v2521_v58 }
 0x9b1   :  { %v1856_v15 = vrot.slane %v2638_v49, %v1855_v12 }
 0x9b5   :  { %v2157_v18 = vpop.f32.mrb[16].mxu1 }
 0x9b6   :  { %v1312_v19 = vpop.f32.mrb[17].mxu1 }
 0x9b7   :  { %2160 = vmatprep.mubr.msk.f32.mxu0 %vm267_vm1, %v1312_v19  ;;  %v1736_v19 = vld [vmem:[%s2724_s7 + $0x28] sm:$0xff] }
 0x9b8   :  { %2161 = vmatmul.mubr.msk.f32.vlgmr.msra.gmra.mrb[14].mxu0 %vm267_vm1, %v2157_v18  ;;  %v1735_v18 = vld [vmem:[%s2724_s7 + $0x20] sm:$0xff] }
 0x9b9   :  { %2164 = vmatpush3.xpose.msk.msra.mxu0 %vm349_vm2, %v2521_v58 }
 0x9ba   :  { %2168 = vmatprep.subr.mxu0 %v1508_v40 }
 0xa8b   :  { %v2162_v20 = vpop.f32.mrb[14].mxu0 }
 0xa8c   :  { %v1399_v21 = vadd.f32 %v2162_v20, %v2509_v41  ;;  %v1393_v22 = vpop.f32.mrb[15].mxu0  ;;  %v2259_v20 = vpack.c.bf16 %v1736_v19, %v1735_v18 }
 0xa8d   :  { %v1394_v23 = vadd.f32 %v1393_v22, %v2504_v39 }
 0xa8e   :  { %v1405_v26 = vsel %vm349_vm2, %v1399_v21, -inf }
 0xa8f   :  { %1406 = vmax.xlane.f32.xlu1 %v1405_v26  ;;  %v1402_v24 = vsel %vm349_vm2, %v1394_v23, -inf }
 0xa90   :  { %1403 = vmax.xlane.f32.xlu0 %v1402_v24 }
 0xb1c   :  { %v1407_v25 = vpop.xlane.xlu1 %1406 }
 0xb1d   :  { %v1409_v27 = vsub.f32 %v1399_v21, %v1407_v25  ;;  %v1404_v28 = vpop.xlane.xlu0 %1403 }
 0xb1e   :  { %v1408_v29 = vsub.f32 %v1394_v23, %v1404_v28  ;;  %v1636_v28 = vsub.s32 2, %v2632_v47 }
 0xb1f   :  { %v1412_v30 = vmul.f32 1.442695, %v1409_v27  ;;  %v1630_v27 = vsub.s32 1, %v2632_v47 }
 0xb20   :  { %v1410_v31 = vmul.f32 1.442695, %v1408_v29 }
 0xb21   :  { %2300 = vpow2.f32 %v1412_v30  ;;  %v1631_v29 = vrot.slane %v2638_v49, %v1630_v27 }
 0xb22   :  { %2302 = vpow2.f32 %v1410_v31 }
 0xb2b   :  { %v2301_v58 = vpop.eup %2300 }
 0xb2c   :  { %v2303_v32 = vpop.eup %2302  ;;  %v1417_v41 = vsel %vm349_vm2, %v2301_v58, 0.0 }
 0xb2d   :  { %1418 = vadd.xlane.f32.xlu1 %v1417_v41  ;;  %v1414_v39 = vsel %vm349_vm2, %v2303_v32, 0.0  ;;  %v1637_v41 = vrot.slane %v2638_v49, %v1636_v28 }
 0xb2e   :  { %1415 = vadd.xlane.f32.xlu0 %v1414_v39 }
 0xbba   :  { %v1419_v33 = vpop.xlane.xlu1 %1418 }
 0xbbb   :  { %2304 = vrcp.f32 %v1419_v33  ;;  %v1416_v34 = vpop.xlane.xlu0 %1415 }
 0xbbc   :  { %2306 = vrcp.f32 %v1416_v34 }
 0xbc5   :  { %v2305_v35 = vpop.eup %2304 }
 0xbc6   :  { %v2307_v36 = vpop.eup %2306  ;;  %v1423_v38 = vmul.f32 %v2305_v35, %v2301_v58 }
 0xbc7   :  { %v1422_v37 = vmul.f32 %v2307_v36, %v2303_v32  ;;  %v1737_v36 = vld [vmem:[%s2724_s7 + $0x30] sm:$0xff] }
 0xbc9   :  { %2165 = vmatprep.mubr.msk.f32.mxu0 %vm349_vm2, %v1422_v37  ;;  %v1738_v37 = vld [vmem:[%s2724_s7 + $0x38] sm:$0xff]  ;;  %s2340_s7 = smov [#allocation2]  }
 0xbca   :  { %2166 = vmatmul.mubr.msk.f32.vlgmr.msra.gmra.mrb[16].mxu0 %vm349_vm2, %v1423_v38  ;;  %v2263_v38 = vpack.c.bf16 %v1738_v37, %v1737_v36  ;;  %s1872_s0 = sshll.u32 %s2340_s7, 4  ;;  %s1873_s0 = int_to_ptr.vmem [resolvable:$true] %s1872_s0 }
 0xbcb   :  { %2169 = vmatpush3.msra.mxu0 %v1508_v40  ;;  %v1646_v40 = vsub.s32 3, %v2632_v47  ;;  %s2316_s3 = scalar_lea.vmem %s1873_s0, 256  ;;  %p2321_p1 = scmp.lt.s32.totalorder %s1873_s0, %s1873_s0 }
 0xbcc   :  { %2252 = vmatprep.subr.bf16.mxu0 %v2251_v14  ;;  %p2317_p0 = scmp.ne.s32.totalorder %s1873_s0, %s2316_s3  ;;  %p2322_p2 = scmp.lt.s32.totalorder %s2316_s3, %s2316_s3 }
 0xbce   :  { %p2323_p3 = por %p2322_p2, %p2321_p1 }
 0xbd0   :  { %p2324_p4 = pnand %p2323_p3, %p2317_p0 }
 0xc9d   :  { %v2167_v42 = vpop.f32.mrb[16].mxu0 }
 0xc9e   :  { %v1499_v43 = vpop.f32.mrb[17].mxu0 }
 0xc9f   :  { %2170 = vmatprep.mubr.msk.f32.mxu0 %vm267_vm1, %v1499_v43 }
 0xca0   :  { %2171 = vmatmul.mubr.msk.f32.vlgmr.msra.gmra.mrb[10].mxu0 %vm267_vm1, %v2167_v42  ;;  %v1647_v42 = vrot.slane %v2638_v49, %v1646_v40 }
 0xca1   :  { %2254 = vmatpush3.bf16.msra.mxu0 %v2251_v14  ;;  %v1861_v14 = vsub.s32 6, %v2632_v47 }
 0xca2   :  { %2256 = vmatprep.subr.bf16.mxu0 %v2255_v16 }
 0xca5   :  { %2258 = vmatpush3.bf16.msra.mxu0 %v2255_v16 }
 0xca6   :  { %2260 = vmatprep.subr.bf16.mxu0 %v2259_v20 }
 0xca9   :  { %2262 = vmatpush3.bf16.msra.mxu0 %v2259_v20  ;;  %v1862_v20 = vrot.slane %v2638_v49, %v1861_v14 }
 0xcaa   :  { %2264 = vmatprep.subr.bf16.mxu0 %v2263_v38 }
 0xcad   :  { %2266 = vmatpush3.bf16.msra.mxu0 %v2263_v38 }
 0xd73   :  { %v2172_v50 = vpop.f32.mrb[10].mxu0 }
 0xd74   :  { %v2267_v51 = vadd.f32 %v2172_v50, %v2576_v44  ;;  %v1581_v52 = vpop.f32.mrb[11].mxu0 }
 0xd75   :  { %v2268_v54 = vadd.f32 %v1581_v52, %v2578_v45 }
 0xd76   :  { %v1593_v55 = vadd.f32 %v2267_v51, %v2440_v17 }
 0xd77   :  { %v1592_v56 = vadd.f32 %v2268_v54, %v2423_v13 }
 0xd78   :  { %v1599_v57 = vadd.f32 %v1597_v53, %v1593_v55 }
 0xd79   :  { %v1598_v59 = vadd.f32 %v1597_v53, %v1592_v56  ;;  %v1741_v53 = vsub.s32 4, %v2632_v47 }
 0xd7a   :  { %v1604_v60 = vsel %vm1600_vm3, %v1599_v57, 0.0 }
 0xd7b   :  { %1605 = vadd.xlane.f32.xlu1 %v1604_v60  ;;  %v1601_v61 = vsel %vm1600_vm3, %v1598_v59, 0.0  ;;  %v1742_v54 = vrot.slane %v2638_v49, %v1741_v53 }
 0xd7c   :  { %1602 = vadd.xlane.f32.xlu0 %v1601_v61 }
 0xe08   :  { %v1606_v62 = vpop.xlane.xlu1 %1605 }
 0xe09   :  { %v1609_v44 = vmul.f32 0.03125, %v1606_v62  ;;  %v1603_v63 = vpop.xlane.xlu0 %1602 }
 0xe0a   :  { %v1608_v0 = vmul.f32 0.03125, %v1603_v63 }
 0xe0b   :  { %v1611_v1 = vsub.f32 %v1599_v57, %v1609_v44 }
 0xe0c   :  { %v1610_v2 = vsub.f32 %v1598_v59, %v1608_v0 }
 0xe0d   :  { %v1613_v45 = vmul.f32 %v1611_v1, %v1611_v1 }
 0xe0e   :  { %v1612_v3 = vmul.f32 %v1610_v2, %v1610_v2 }
 0xe0f   :  { %v1617_v17 = vsel %vm1600_vm3, %v1613_v45, 0.0 }
 0xe10   :  { %1618 = vadd.xlane.f32.xlu1 %v1617_v17  ;;  %v1614_v13 = vsel %vm1600_vm3, %v1612_v3, 0.0 }
 0xe11   :  { %1615 = vadd.xlane.f32.xlu0 %v1614_v13 }
 0xe9d   :  { %v1619_v21 = vpop.xlane.xlu1 %1618 }
 0xe9e   :  { %v1621_v22 = vmul.f32 0.03125, %v1619_v21  ;;  %v1616_v23 = vpop.xlane.xlu0 %1615 }
 0xe9f   :  { %v1620_v26 = vmul.f32 0.03125, %v1616_v23 }
 0xea0   :  { %v1623_v24 = vadd.f32 1e-05, %v1621_v22 }
 0xea1   :  { %v1622_v25 = vadd.f32 1e-05, %v1620_v26 }
 0xea2   :  { %2308 = vrsqrt.f32 %v1623_v24 }
 0xea3   :  { %2310 = vrsqrt.f32 %v1622_v25 }
 0xeac   :  { %v2309_v30 = vpop.eup %2308 }
 0xead   :  { %v2311_v31 = vpop.eup %2310  ;;  %v1627_v58 = vmul.f32 %v2309_v30, %v1611_v1 }
 0xeae   :  { %v1626_v32 = vmul.f32 %v2311_v31, %v1610_v2 }
 0xeaf   :  { %v1633_v39 = vmul.f32 %v1631_v29, %v1627_v58 }
 0xeb0   :  { %v1632_v33 = vmul.f32 %v1631_v29, %v1626_v32 }
 0xeb1   :  { %v1639_v35 = vadd.f32 %v1637_v41, %v1633_v39 }
 0xeb2   :  { %v1638_v34 = vadd.f32 %v1637_v41, %v1632_v33 }
 0xeb4   :  { %2181 = vmatprep.mubr.msk.f32.mxu1 %vm1600_vm3, %v1638_v34 }
 0xeb5   :  { %2182 = vmatmul.mubr.msk.f32.vlgmr.msra.gmra.mrb[18].mxu1 %vm1600_vm3, %v1639_v35 }
 0xf88   :  { %v2183_v43 = vpop.f32.mrb[18].mxu1 }
 0xf89   :  { %v1726_v46 = vadd.f32 %v2183_v43, %v1647_v42  ;;  %v1720_v48 = vpop.f32.mrb[19].mxu1 }
 0xf8a   :  { %v1721_v50 = vadd.f32 %v1720_v48, %v1647_v42 }
 0xf8b   :  { %v1730_v52 = vmax.f32 %v1726_v46, 0.0 }
 0xf8c   :  { %v1729_v51 = vmax.f32 %v1721_v50, 0.0 }
 0xf8e   :  { %2200 = vmatprep.mubr.msk.f32.mxu0 %vm1743_vm4, %v1729_v51 }
 0xf8f   :  { %2201 = vmatmul.mubr.msk.f32.vlgmr.msra.gmra.mrb[18].mxu0 %vm1743_vm4, %v1730_v52 }
0x1062   :  { %v2202_v55 = vpop.f32.mrb[18].mxu0 }
0x1063   :  { %v1822_v56 = vadd.f32 %v2202_v55, %v1742_v54  ;;  %v1816_v57 = vpop.f32.mrb[19].mxu0 }
0x1064   :  { %v1817_v59 = vadd.f32 %v1816_v57, %v1742_v54 }
0x1065   :  { %v1826_v60 = vadd.f32 %v1822_v56, %v1639_v35 }
0x1066   :  { %v1825_v61 = vadd.f32 %v1817_v59, %v1638_v34 }
0x1067   :  { %v1830_v62 = vsel %vm1600_vm3, %v1826_v60, 0.0 }
0x1068   :  { %1831 = vadd.xlane.f32.xlu1 %v1830_v62  ;;  %v1827_v44 = vsel %vm1600_vm3, %v1825_v61, 0.0 }
0x1069   :  { %1828 = vadd.xlane.f32.xlu0 %v1827_v44 }
0x10f5   :  { %v1832_v63 = vpop.xlane.xlu1 %1831 }
0x10f6   :  { %v1834_v0 = vmul.f32 0.03125, %v1832_v63  ;;  %v1829_v1 = vpop.xlane.xlu0 %1828 }
0x10f7   :  { %v1833_v2 = vmul.f32 0.03125, %v1829_v1 }
0x10f8   :  { %v1836_v45 = vsub.f32 %v1826_v60, %v1834_v0 }
0x10f9   :  { %v1835_v3 = vsub.f32 %v1825_v61, %v1833_v2 }
0x10fa   :  { %v1838_v17 = vmul.f32 %v1836_v45, %v1836_v45 }
0x10fb   :  { %v1837_v13 = vmul.f32 %v1835_v3, %v1835_v3 }
0x10fc   :  { %v1842_v4 = vsel %vm1600_vm3, %v1838_v17, 0.0 }
0x10fd   :  { %1843 = vadd.xlane.f32.xlu1 %v1842_v4  ;;  %v1839_v5 = vsel %vm1600_vm3, %v1837_v13, 0.0 }
0x10fe   :  { %1840 = vadd.xlane.f32.xlu0 %v1839_v5 }
0x118a   :  { %v1844_v6 = vpop.xlane.xlu1 %1843 }
0x118b   :  { %v1846_v7 = vmul.f32 0.03125, %v1844_v6  ;;  %v1841_v8 = vpop.xlane.xlu0 %1840 }
0x118c   :  { %v1845_v9 = vmul.f32 0.03125, %v1841_v8 }
0x118d   :  { %v1848_v10 = vadd.f32 1e-05, %v1846_v7 }
0x118e   :  { %v1847_v11 = vadd.f32 1e-05, %v1845_v9 }
0x118f   :  { %2312 = vrsqrt.f32 %v1848_v10 }
0x1190   :  { %2314 = vrsqrt.f32 %v1847_v11 }
0x1199   :  { %v2313_v16 = vpop.eup %2312 }
0x119a   :  { %v2315_v18 = vpop.eup %2314  ;;  %v1852_v19 = vmul.f32 %v2313_v16, %v1836_v45 }
0x119b   :  { %v1851_v21 = vmul.f32 %v2315_v18, %v1835_v3 }
0x119c   :  { %v1858_v22 = vmul.f32 %v1856_v15, %v1852_v19 }
0x119d   :  { %v1857_v23 = vmul.f32 %v1856_v15, %v1851_v21 }
0x119e   :  { %v1864_v26 = vadd.f32 %v1862_v20, %v1858_v22 }
0x119f   :  { %v1863_v24 = vadd.f32 %v1862_v20, %v1857_v23 }
0x11a0   :  { %1866 = vst.msk [vmem:[#allocation2 + $0x8] sm:$0xff] %vm1600_vm3, %v1864_v26 }
0x11a1   :  { %1865 = vst.msk [vmem:[#allocation2] sm:$0xff] %vm1600_vm3, %v1863_v24 }
0x11a2   :  { %2327 = shalt.err (!%p2324_p4)
}
0x11a3   :  { %s2328_s19 = scalar_lea.hbm %s2726_s9, 256 }
0x11a4   :  { %p2329_p5 = scmp.ne.s32.totalorder %s2726_s9, %s2328_s19  ;;  %p2332_p6 = scmp.lt.u32.totalorder %s2328_s19, %s2726_s9 }
0x11a6   :  { %p2334_p7 = pnand %p2332_p6, %p2329_p5 }
0x11a8   :  { %2337 = shalt.err (!%p2334_p7)
}
0x11a9   :  { %s2341_s21 = smov 128   ;;  %s2342_s22 = smov 8  }
0x11aa   :  { %1878 = dma.vmem_to_hbm [thread:$0]  %s1873_s0, 256, %s2726_s9, [#allocation3], %s2341_s21, %s2341_s21, %s2342_s22  }
0x11ab   :  { %2338 = dma.done.wait [#allocation3], 256  }
0x11ac   :  { %2339 = vsyncadd [#allocation3], 4294967040 }
0x11ad   :  { %1882 = vsyncpa [#allocation3], 1 }

</bundles_post_ra>
